<compile_context>
chip_gen: v5e
topology: v5e:2x2
jax: 0.10.0
libtpu: 0.0.40
codegen_flags: <defaults>
</compile_context>

<pallas_src>
import numpy as np
import jax
import jax.numpy as jnp
from jax.experimental import pallas as pl
from jax.experimental.pallas import tpu as pltpu


# empty_weight buffer from SetCriterion.__init__ (num_classes = 1):
#   weight[0] = 0.05 (no-match class), weight[1] = 1.0 (match class).
_W0 = 0.05
_W1 = 1.0


def set_criterion_kernel(diff_ref, m_ref, out_ref,
                         num_acc, den_acc, cor_acc, dt_acc):
    """Grid = (batch chunks, lane chunks).  One step = (Bt, DTt) tile.

    diff_ref : (Bt, DTt)  x1 - x0 logit difference
    m_ref    : (Bt, DTt)  merged mask in {0,1,2}: 0 = invalid, 1 = valid/tgt0, 2 = valid/tgt1
    out_ref  : (Bt, 128)  per-batch partials in lanes 0..3 (written at last lane chunk):
                          [loss_b, correct_b, det*track_b, has_valid_b]
    *_acc    : (Bt, 1)    VMEM accumulators across the lane-chunk ("arbitrary") axis
    """
    k = pl.program_id(1)

    @pl.when(k == 0)
    def _init():
        num_acc[...] = jnp.zeros_like(num_acc)
        den_acc[...] = jnp.zeros_like(den_acc)
        cor_acc[...] = jnp.zeros_like(cor_acc)
        dt_acc[...] = jnp.zeros_like(dt_acc)

    diff = diff_ref[...]                       # (Bt, DTt)
    m = m_ref[...]                             # (Bt, DTt) in {0,1,2}
    valid = (m > 0.5).astype(jnp.float32)
    tgt = (m > 1.5).astype(jnp.float32)

    # Weighted 2-class cross-entropy in softplus form:
    #   nll = -log softmax(x)[target] = softplus((1 - 2*tgt) * (x1 - x0))
    d = (1.0 - 2.0 * tgt) * diff
    nll = jnp.maximum(d, 0.0) + jnp.log1p(jnp.exp(-jnp.abs(d)))

    w = _W0 + (_W1 - _W0) * tgt                # per-element class weight
    vw = valid * w                             # masked weight (reused by num & den)

    num_acc[...] += jnp.sum(vw * nll, axis=-1, keepdims=True)   # (Bt, 1)
    den_acc[...] += jnp.sum(vw, axis=-1, keepdims=True)         # (Bt, 1)

    # top-1: predicted class 1 iff x1 > x0 (argmax tie -> class 0, like torch/np)
    pred1 = (diff > 0.0).astype(jnp.float32)
    match = 1.0 - jnp.abs(pred1 - tgt)                          # 1 where pred == target
    cor_acc[...] += jnp.sum(valid * match, axis=-1, keepdims=True)
    dt_acc[...] += jnp.sum(valid, axis=-1, keepdims=True)       # = det*track

    @pl.when(k == pl.num_programs(1) - 1)
    def _finalize():
        num_t = num_acc[...]
        den_t = den_acc[...]
        cor_t = cor_acc[...]
        dt_t = dt_acc[...]
        has = dt_t > 0.5
        has_f = has.astype(jnp.float32)
        loss_b = jnp.where(has, num_t / jnp.maximum(den_t, 1e-20), 0.0)

        # Lane-dense per-batch partial output (single unmasked vst).
        lane = jax.lax.broadcasted_iota(jnp.int32, out_ref.shape, 1)
        out_ref[...] = jnp.where(lane == 0, loss_b,
                       jnp.where(lane == 1, cor_t,
                       jnp.where(lane == 2, dt_t,
                       jnp.where(lane == 3, has_f, 0.0))))


def set_criterion_forward(match_matrix, det_num, track_num, labels):
    """match_matrix: (B, Dmax, Tmax, 2) f32; det_num/track_num: (B,) int;
    labels: (B, Dmax) int32 padded with -1.  Returns (losses, accuracy_dict).

    Assumes labels[b, i] in [0, track_num[b]) or -1 for rows i < det_num[b]
    (same assumption as the reference, which would index OOB otherwise)."""
    B, Dmax, Tmax, C = match_matrix.shape
    assert C == 2  # num_classes + 1

    DT = Dmax * Tmax
    DT128 = ((DT + 127) // 128) * 128          # lane-dense last dim (multiple of 128)

    # ---- adaptive tiling -----------------------------------------------------
    # Bt: batch rows per step, multiple of 8, sized so each input block is ~512 KiB
    # (amortizes the ~0.35 us per-grid-step cost) but capped so that, when B allows,
    # there are >= 2 batch chunks (lets "parallel" shard across v7x's 2 TensorCores).
    bytes_per_row = DT128 * 4
    target_rows = max(8, ((512 * 1024) // max(bytes_per_row, 1) // 8) * 8)
    Bp_min = ((B + 7) // 8) * 8
    Bt = min(target_rows, Bp_min)
    if Bp_min >= 16:
        Bt = min(Bt, ((Bp_min // 2 + 7) // 8) * 8)
    num_chunks = -(-B // Bt)
    Bp = num_chunks * Bt

    # DTt: lane tile, multiple of 128, keeps 2 streams * Bt * DTt * 4 B * 2 buffers
    # under ~8 MiB -> safely inside default scoped VMEM on v5e (16 MiB) / v6e / v7x.
    lane_budget_elems = (8 * 1024 * 1024) // (2 * 2 * 4 * Bt)
    DTt = min(DT128, max(128, (lane_budget_elems // 128) * 128))
    num_lane_chunks = -(-DT128 // DTt)
    DTp = num_lane_chunks * DTt

    det = det_num.astype(jnp.int32)
    trk = track_num.astype(jnp.int32)
    lab = labels.astype(jnp.int32)

    # Only x1 - x0 is needed by the loss and the argmax: single fused elementwise pass,
    # half the logits bytes into the kernel, no transpose.
    diff = (match_matrix[..., 1] - match_matrix[..., 0]).astype(jnp.float32).reshape(B, DT)

    # Merged target/valid plane: m = valid * (1 + tgt) in {0, 1, 2}. Tiny XLA prep, fuses.
    t_idx = jnp.arange(Tmax, dtype=jnp.int32)
    d_idx = jnp.arange(Dmax, dtype=jnp.int32)
    tgt = (lab[:, :, None] == t_idx[None, None, :]).astype(jnp.float32)
    valid = ((d_idx[None, :, None] < det[:, None, None]) &
             (t_idx[None, None, :] < trk[:, None, None])).astype(jnp.float32)
    m = (valid * (1.0 + tgt)).reshape(B, DT)

    # Pad lane axis to num_lane_chunks*DTt and batch axis to num_chunks*Bt
    # (padding has m = 0 -> valid = 0, contributes nothing).
    diff = jnp.pad(diff, ((0, Bp - B), (0, DTp - DT)))
    m = jnp.pad(m, ((0, Bp - B), (0, DTp - DT)))

    grid_spec = pltpu.PrefetchScalarGridSpec(
        num_scalar_prefetch=0,
        grid=(num_chunks, num_lane_chunks),
        in_specs=[
            pl.BlockSpec((Bt, DTt), lambda c, k: (c, k)),
            pl.BlockSpec((Bt, DTt), lambda c, k: (c, k)),
        ],
        out_specs=pl.BlockSpec((Bt, 128), lambda c, k: (c, 0)),
        scratch_shapes=[pltpu.VMEM((Bt, 1), jnp.float32)] * 4,
    )

    cost = pl.CostEstimate(
        flops=int(12 * Bp * DTp),
        transcendentals=int(2 * Bp * DTp),          # exp + log1p per element
        bytes_accessed=int((2 * Bp * DTp + Bp * 128) * 4),
    )

    out = pl.pallas_call(
        set_criterion_kernel,
        grid_spec=grid_spec,
        out_shape=jax.ShapeDtypeStruct((Bp, 128), jnp.float32),
        compiler_params=pltpu.CompilerParams(
            dimension_semantics=("parallel", "arbitrary")),
        cost_estimate=cost,
    )(diff, m)

    # Final tiny reduction (4 scalars) stays in XLA.
    parts = out[:B, :4]                      # (B, 4): loss, correct, det*track, has
    loss_sum = jnp.sum(parts[:, 0])
    correct = jnp.sum(parts[:, 1])
    dt_sum = jnp.sum(parts[:, 2])
    vb = jnp.sum(parts[:, 3])

    losses = {"loss_ce": loss_sum / jnp.maximum(vb, 1.0)}
    accuracy_dict = {"precision": correct / (dt_sum + 1e-5)}
    return losses, accuracy_dict


def reference_numpy(match_matrix, det_num, track_num, labels, w0=0.05, w1=1.0):
    mm = np.asarray(match_matrix, dtype=np.float64)
    det = np.asarray(det_num)
    trk = np.asarray(track_num)
    lab = np.asarray(labels)
    B = mm.shape[0]
    loss_sum, valid_bs, correct, dt_sum = 0.0, 0, 0.0, 0.0
    for b in range(B):
        D, T = int(det[b]), int(trk[b])
        dt_sum += D * T
        if D * T == 0:
            continue
        logits = mm[b, :D, :T, :].reshape(D * T, 2)
        tgt = np.zeros((D, T), dtype=np.int64)
        for i in range(D):
            if lab[b, i] != -1:
                tgt[i, lab[b, i]] = 1
        tgt = tgt.reshape(-1)
        mx = logits.max(axis=1, keepdims=True)
        lse = mx[:, 0] + np.log(np.exp(logits - mx).sum(axis=1))
        logp_t = logits[np.arange(D * T), tgt] - lse
        w = np.where(tgt == 1, w1, w0)
        loss_sum += np.sum(w * -logp_t) / np.sum(w)
        valid_bs += 1
        pred = np.argmax(logits, axis=1)
        correct += float(np.sum(pred == tgt))
    loss_ce = loss_sum / max(valid_bs, 1)
    precision = correct / (dt_sum + 1e-5)
    return loss_ce, precision


if __name__ == "__main__":
    key = jax.random.PRNGKey(0)
    B, Dmax, Tmax = 2, 8, 16
    k1, k2 = jax.random.split(key)

    match_matrix = jax.random.normal(k1, (B, Dmax, Tmax, 2), dtype=jnp.float32)
    det_num = jnp.array([6, 8], dtype=jnp.int32)
    track_num = jnp.array([13, 5], dtype=jnp.int32)

    raw = jax.random.randint(k2, (B, Dmax), minval=-1, maxval=Tmax)
    row_idx = jnp.arange(Dmax)[None, :]
    labels = jnp.where(
        (row_idx < det_num[:, None]) & (raw < track_num[:, None]), raw, -1
    ).astype(jnp.int32)

    losses, acc = set_criterion_forward(match_matrix, det_num, track_num, labels)
    jax.block_until_ready(losses["loss_ce"])

    ref_loss, ref_prec = reference_numpy(match_matrix, det_num, track_num, labels)
    assert abs(float(losses["loss_ce"]) - ref_loss) < 1e-3, (
        float(losses["loss_ce"]), ref_loss)
    assert abs(float(acc["precision"]) - ref_prec) < 1e-3, (
        float(acc["precision"]), ref_prec)

    print("KERNEL_OK")
</pallas_src>

<mosaic_0001>
module attributes {stable_mosaic.version = 11 : i64} {
  func.func @set_criterion_kernel(%arg0: i32, %arg1: i32, %arg2: memref<8x128xf32, #tpu.memory_space<vmem>>, %arg3: memref<8x128xf32, #tpu.memory_space<vmem>>, %arg4: memref<8x128xf32, #tpu.memory_space<vmem>>, %arg5: memref<8x1xf32, #tpu.memory_space<vmem>>, %arg6: memref<8x1xf32, #tpu.memory_space<vmem>>, %arg7: memref<8x1xf32, #tpu.memory_space<vmem>>, %arg8: memref<8x1xf32, #tpu.memory_space<vmem>>) attributes {dimension_semantics = [#tpu.dimension_semantics<parallel>, #tpu.dimension_semantics<arbitrary>], iteration_bounds = array<i64: 1, 1>, scalar_prefetch = 0 : i64, scratch_operands = 4 : i64, tpu.core_type = #tpu.core_type<tc>, window_params = [{transform_indices = @transform_0, window_bounds = array<i64: 8, 128>}, {transform_indices = @transform_1, window_bounds = array<i64: 8, 128>}, {transform_indices = @transform_2, window_bounds = array<i64: 8, 128>}]} {
    %c0_i32 = arith.constant 0 : i32
    %0 = arith.cmpi eq, %arg1, %c0_i32 : i32
    %1 = arith.extui %0 : i1 to i32
    %c0_i32_0 = arith.constant 0 : i32
    %2 = arith.cmpi ne, %1, %c0_i32_0 : i32
    scf.if %2 {
      %cst_35 = arith.constant 0.000000e+00 : f32
      %64 = vector.broadcast %cst_35 : f32 to vector<8x1xf32>
      %c0_36 = arith.constant 0 : index
      %c0_37 = arith.constant 0 : index
      %65 = vector.load %arg5[%c0_36, %c0_37] : memref<8x1xf32, #tpu.memory_space<vmem>>, vector<8x1xf32>
      tpu.vector_store %arg5[%c0_36, %c0_37], %64 {strides = array<i32>} : memref<8x1xf32, #tpu.memory_space<vmem>>, vector<8x1xf32>,
      %cst_38 = arith.constant 0.000000e+00 : f32
      %66 = vector.broadcast %cst_38 : f32 to vector<8x1xf32>
      %c0_39 = arith.constant 0 : index
      %c0_40 = arith.constant 0 : index
      %67 = vector.load %arg6[%c0_39, %c0_40] : memref<8x1xf32, #tpu.memory_space<vmem>>, vector<8x1xf32>
      tpu.vector_store %arg6[%c0_39, %c0_40], %66 {strides = array<i32>} : memref<8x1xf32, #tpu.memory_space<vmem>>, vector<8x1xf32>,
      %cst_41 = arith.constant 0.000000e+00 : f32
      %68 = vector.broadcast %cst_41 : f32 to vector<8x1xf32>
      %c0_42 = arith.constant 0 : index
      %c0_43 = arith.constant 0 : index
      %69 = vector.load %arg7[%c0_42, %c0_43] : memref<8x1xf32, #tpu.memory_space<vmem>>, vector<8x1xf32>
      tpu.vector_store %arg7[%c0_42, %c0_43], %68 {strides = array<i32>} : memref<8x1xf32, #tpu.memory_space<vmem>>, vector<8x1xf32>,
      %cst_44 = arith.constant 0.000000e+00 : f32
      %70 = vector.broadcast %cst_44 : f32 to vector<8x1xf32>
      %c0_45 = arith.constant 0 : index
      %c0_46 = arith.constant 0 : index
      %71 = vector.load %arg8[%c0_45, %c0_46] : memref<8x1xf32, #tpu.memory_space<vmem>>, vector<8x1xf32>
      tpu.vector_store %arg8[%c0_45, %c0_46], %70 {strides = array<i32>} : memref<8x1xf32, #tpu.memory_space<vmem>>, vector<8x1xf32>,
    } else {
    }
    %c0 = arith.constant 0 : index
    %c0_1 = arith.constant 0 : index
    %3 = vector.load %arg2[%c0, %c0_1] : memref<8x128xf32, #tpu.memory_space<vmem>>, vector<8x128xf32>
    %c0_2 = arith.constant 0 : index
    %c0_3 = arith.constant 0 : index
    %4 = vector.load %arg3[%c0_2, %c0_3] : memref<8x128xf32, #tpu.memory_space<vmem>>, vector<8x128xf32>
    %cst = arith.constant 5.000000e-01 : f32
    %5 = vector.broadcast %cst : f32 to vector<8x128xf32>
    %6 = arith.cmpf ogt, %4, %5 : vector<8x128xf32>
    %7 = arith.extui %6 : vector<8x128xi1> to vector<8x128xi32>
    %8 = arith.sitofp %7 : vector<8x128xi32> to vector<8x128xf32>
    %cst_4 = arith.constant 1.500000e+00 : f32
    %9 = vector.broadcast %cst_4 : f32 to vector<8x128xf32>
    %10 = arith.cmpf ogt, %4, %9 : vector<8x128xf32>
    %11 = arith.extui %10 : vector<8x128xi1> to vector<8x128xi32>
    %12 = arith.sitofp %11 : vector<8x128xi32> to vector<8x128xf32>
    %cst_5 = arith.constant 2.000000e+00 : f32
    %13 = vector.broadcast %cst_5 : f32 to vector<8x128xf32>
    %14 = arith.mulf %13, %12 : vector<8x128xf32>
    %cst_6 = arith.constant 1.000000e+00 : f32
    %15 = vector.broadcast %cst_6 : f32 to vector<8x128xf32>
    %16 = arith.subf %15, %14 : vector<8x128xf32>
    %17 = arith.mulf %16, %3 : vector<8x128xf32>
    %cst_7 = arith.constant 0.000000e+00 : f32
    %18 = vector.broadcast %cst_7 : f32 to vector<8x128xf32>
    %19 = arith.maximumf %17, %18 : vector<8x128xf32>
    %20 = math.absf %17 : vector<8x128xf32>
    %cst_8 = arith.constant 0.000000e+00 : f32
    %21 = vector.broadcast %cst_8 : f32 to vector<8x128xf32>
    %22 = arith.subf %21, %20 : vector<8x128xf32>
    %23 = math.exp %22 : vector<8x128xf32>
    %24 = math.log1p %23 : vector<8x128xf32>
    %25 = arith.addf %19, %24 : vector<8x128xf32>
    %cst_9 = arith.constant 0.949999988 : f32
    %26 = vector.broadcast %cst_9 : f32 to vector<8x128xf32>
    %27 = arith.mulf %26, %12 : vector<8x128xf32>
    %cst_10 = arith.constant 5.000000e-02 : f32
    %28 = vector.broadcast %cst_10 : f32 to vector<8x128xf32>
    %29 = arith.addf %28, %27 : vector<8x128xf32>
    %30 = arith.mulf %8, %29 : vector<8x128xf32>
    %c0_11 = arith.constant 0 : index
    %c0_12 = arith.constant 0 : index
    %31 = vector.load %arg5[%c0_11, %c0_12] : memref<8x1xf32, #tpu.memory_space<vmem>>, vector<8x1xf32>
    %32 = arith.mulf %30, %25 : vector<8x128xf32>
    %cst_13 = arith.constant dense<0.000000e+00> : vector<8xf32>
    %33 = vector.multi_reduction <add>, %32, %cst_13 [1] : vector<8x128xf32> to vector<8xf32>
    %34 = vector.shape_cast %33 : vector<8xf32> to vector<8x1xf32>
    %35 = arith.addf %31, %34 : vector<8x1xf32>
    %c0_14 = arith.constant 0 : index
    %c0_15 = arith.constant 0 : index
    %36 = vector.load %arg5[%c0_14, %c0_15] : memref<8x1xf32, #tpu.memory_space<vmem>>, vector<8x1xf32>
    tpu.vector_store %arg5[%c0_14, %c0_15], %35 {strides = array<i32>} : memref<8x1xf32, #tpu.memory_space<vmem>>, vector<8x1xf32>,
    %c0_16 = arith.constant 0 : index
    %c0_17 = arith.constant 0 : index
    %37 = vector.load %arg6[%c0_16, %c0_17] : memref<8x1xf32, #tpu.memory_space<vmem>>, vector<8x1xf32>
    %cst_18 = arith.constant dense<0.000000e+00> : vector<8xf32>
    %38 = vector.multi_reduction <add>, %30, %cst_18 [1] : vector<8x128xf32> to vector<8xf32>
    %39 = vector.shape_cast %38 : vector<8xf32> to vector<8x1xf32>
    %40 = arith.addf %37, %39 : vector<8x1xf32>
    %c0_19 = arith.constant 0 : index
    %c0_20 = arith.constant 0 : index
    %41 = vector.load %arg6[%c0_19, %c0_20] : memref<8x1xf32, #tpu.memory_space<vmem>>, vector<8x1xf32>
    tpu.vector_store %arg6[%c0_19, %c0_20], %40 {strides = array<i32>} : memref<8x1xf32, #tpu.memory_space<vmem>>, vector<8x1xf32>,
    %cst_21 = arith.constant 0.000000e+00 : f32
    %42 = vector.broadcast %cst_21 : f32 to vector<8x128xf32>
    %43 = arith.cmpf ogt, %3, %42 : vector<8x128xf32>
    %44 = arith.extui %43 : vector<8x128xi1> to vector<8x128xi32>
    %45 = arith.sitofp %44 : vector<8x128xi32> to vector<8x128xf32>
    %46 = arith.subf %45, %12 : vector<8x128xf32>
    %47 = math.absf %46 : vector<8x128xf32>
    %cst_22 = arith.constant 1.000000e+00 : f32
    %48 = vector.broadcast %cst_22 : f32 to vector<8x128xf32>
    %49 = arith.subf %48, %47 : vector<8x128xf32>
    %c0_23 = arith.constant 0 : index
    %c0_24 = arith.constant 0 : index
    %50 = vector.load %arg7[%c0_23, %c0_24] : memref<8x1xf32, #tpu.memory_space<vmem>>, vector<8x1xf32>
    %51 = arith.mulf %8, %49 : vector<8x128xf32>
    %cst_25 = arith.constant dense<0.000000e+00> : vector<8xf32>
    %52 = vector.multi_reduction <add>, %51, %cst_25 [1] : vector<8x128xf32> to vector<8xf32>
    %53 = vector.shape_cast %52 : vector<8xf32> to vector<8x1xf32>
    %54 = arith.addf %50, %53 : vector<8x1xf32>
    %c0_26 = arith.constant 0 : index
    %c0_27 = arith.constant 0 : index
    %55 = vector.load %arg7[%c0_26, %c0_27] : memref<8x1xf32, #tpu.memory_space<vmem>>, vector<8x1xf32>
    tpu.vector_store %arg7[%c0_26, %c0_27], %54 {strides = array<i32>} : memref<8x1xf32, #tpu.memory_space<vmem>>, vector<8x1xf32>,
    %c0_28 = arith.constant 0 : index
    %c0_29 = arith.constant 0 : index
    %56 = vector.load %arg8[%c0_28, %c0_29] : memref<8x1xf32, #tpu.memory_space<vmem>>, vector<8x1xf32>
    %cst_30 = arith.constant dense<0.000000e+00> : vector<8xf32>
    %57 = vector.multi_reduction <add>, %8, %cst_30 [1] : vector<8x128xf32> to vector<8xf32>
    %58 = vector.shape_cast %57 : vector<8xf32> to vector<8x1xf32>
    %59 = arith.addf %56, %58 : vector<8x1xf32>
    %c0_31 = arith.constant 0 : index
    %c0_32 = arith.constant 0 : index
    %60 = vector.load %arg8[%c0_31, %c0_32] : memref<8x1xf32, #tpu.memory_space<vmem>>, vector<8x1xf32>
    tpu.vector_store %arg8[%c0_31, %c0_32], %59 {strides = array<i32>} : memref<8x1xf32, #tpu.memory_space<vmem>>, vector<8x1xf32>,
    %c0_i32_33 = arith.constant 0 : i32
    %61 = arith.cmpi eq, %arg1, %c0_i32_33 : i32
    %62 = arith.extui %61 : i1 to i32
    %c0_i32_34 = arith.constant 0 : i32
    %63 = arith.cmpi ne, %62, %c0_i32_34 : i32
    scf.if %63 {
      %c0_35 = arith.constant 0 : index
      %c0_36 = arith.constant 0 : index
      %64 = vector.load %arg5[%c0_35, %c0_36] : memref<8x1xf32, #tpu.memory_space<vmem>>, vector<8x1xf32>
      %c0_37 = arith.constant 0 : index
      %c0_38 = arith.constant 0 : index
      %65 = vector.load %arg6[%c0_37, %c0_38] : memref<8x1xf32, #tpu.memory_space<vmem>>, vector<8x1xf32>
      %c0_39 = arith.constant 0 : index
      %c0_40 = arith.constant 0 : index
      %66 = vector.load %arg7[%c0_39, %c0_40] : memref<8x1xf32, #tpu.memory_space<vmem>>, vector<8x1xf32>
      %c0_41 = arith.constant 0 : index
      %c0_42 = arith.constant 0 : index
      %67 = vector.load %arg8[%c0_41, %c0_42] : memref<8x1xf32, #tpu.memory_space<vmem>>, vector<8x1xf32>
      %cst_43 = arith.constant 5.000000e-01 : f32
      %68 = vector.broadcast %cst_43 : f32 to vector<8x1xf32>
      %69 = arith.cmpf ogt, %67, %68 : vector<8x1xf32>
      %70 = arith.extui %69 : vector<8x1xi1> to vector<8x1xi32>
      %71 = arith.sitofp %70 : vector<8x1xi32> to vector<8x1xf32>
      %cst_44 = arith.constant 9.99999968E-21 : f32
      %72 = vector.broadcast %cst_44 : f32 to vector<8x1xf32>
      %73 = arith.maximumf %65, %72 : vector<8x1xf32>
      %74 = arith.divf %64, %73 : vector<8x1xf32>
      %cst_45 = arith.constant 0.000000e+00 : f32
      %75 = vector.broadcast %cst_45 : f32 to vector<8x1xf32>
      %76 = arith.select %69, %74, %75 : vector<8x1xi1>, vector<8x1xf32>
      %77 = tpu.iota {dimensions = array<i32: 1>} : vector<8x128xi32>
      %c0_i32_46 = arith.constant 0 : i32
      %78 = vector.broadcast %c0_i32_46 : i32 to vector<8x128xi32>
      %79 = arith.cmpi eq, %77, %78 : vector<8x128xi32>
      %c1_i32 = arith.constant 1 : i32
      %80 = vector.broadcast %c1_i32 : i32 to vector<8x128xi32>
      %81 = arith.cmpi eq, %77, %80 : vector<8x128xi32>
      %c2_i32 = arith.constant 2 : i32
      %82 = vector.broadcast %c2_i32 : i32 to vector<8x128xi32>
      %83 = arith.cmpi eq, %77, %82 : vector<8x128xi32>
      %c3_i32 = arith.constant 3 : i32
      %84 = vector.broadcast %c3_i32 : i32 to vector<8x128xi32>
      %85 = arith.cmpi eq, %77, %84 : vector<8x128xi32>
      %cst_47 = arith.constant 0.000000e+00 : f32
      %86 = vector.shape_cast %71 : vector<8x1xf32> to vector<8x1xf32>
      %87 = vector.broadcast %86 : vector<8x1xf32> to vector<8x128xf32>
      %88 = vector.broadcast %cst_47 : f32 to vector<8x128xf32>
      %89 = arith.select %85, %87, %88 : vector<8x128xi1>, vector<8x128xf32>
      %90 = vector.shape_cast %67 : vector<8x1xf32> to vector<8x1xf32>
      %91 = vector.broadcast %90 : vector<8x1xf32> to vector<8x128xf32>
      %92 = arith.select %83, %91, %89 : vector<8x128xi1>, vector<8x128xf32>
      %93 = vector.shape_cast %66 : vector<8x1xf32> to vector<8x1xf32>
      %94 = vector.broadcast %93 : vector<8x1xf32> to vector<8x128xf32>
      %95 = arith.select %81, %94, %92 : vector<8x128xi1>, vector<8x128xf32>
      %96 = vector.shape_cast %76 : vector<8x1xf32> to vector<8x1xf32>
      %97 = vector.broadcast %96 : vector<8x1xf32> to vector<8x128xf32>
      %98 = arith.select %79, %97, %95 : vector<8x128xi1>, vector<8x128xf32>
      %c0_48 = arith.constant 0 : index
      %c0_49 = arith.constant 0 : index
      %99 = vector.load %arg4[%c0_48, %c0_49] : memref<8x128xf32, #tpu.memory_space<vmem>>, vector<8x128xf32>
      tpu.vector_store %arg4[%c0_48, %c0_49], %98 {strides = array<i32>} : memref<8x128xf32, #tpu.memory_space<vmem>>, vector<8x128xf32>,
    } else {
    }
    return
  }
  func.func @transform_0(%arg0: i32, %arg1: i32) -> (i32, i32) {
    %c0_i32 = arith.constant 0 : i32
    return %arg0, %arg1 : i32, i32
  }
  func.func @transform_1(%arg0: i32, %arg1: i32) -> (i32, i32) {
    %c0_i32 = arith.constant 0 : i32
    return %arg0, %arg1 : i32, i32
  }
  func.func @transform_2(%arg0: i32, %arg1: i32) -> (i32, i32) {
    %c0_i32 = arith.constant 0 : i32
    %c0_i32_0 = arith.constant 0 : i32
    return %arg0, %c0_i32 : i32, i32
  }
}

</mosaic_0001>

<bundles_post_ra>
// kernel: tpu_custom_call.1
= control target key start
LH: loop header
LB: loop body
LE: loop exit
PB: predicated region body
PF: predicated region fallthrough
CT: control target
= control target key end

     0   :  { %7 = vsyncpa [#allocation7], 0  ;;  %s318_s0 = inlined_call_operand.hbm [shape: f32[8,128], index: 0, kind: input, shape index: {}]   ;;  %s319_s1 = inlined_call_operand.hbm [shape: f32[8,128], index: 1, kind: input, shape index: {}]   ;;  %s320_s2 = inlined_call_operand.hbm [shape: f32[8,128], index: 2, kind: output, shape index: {}]  }
   0x1   :  { %8 = vsyncpa [#allocation10], 0 }
   0x2   :  { %9 = vsyncpa [#allocation8], 0  ;;  %s15_s11 = sshll.u32 %s318_s0, 4  ;;  %s279_s12 = smov [#allocation6]   ;;  %s16_s11 = int_to_ptr.hbm [resolvable:$true] %s15_s11 }
   0x3   :  { %s17_s13 = sshll.u32 %s279_s12, 4  ;;  %s26_s16 = sshll.u32 %s319_s1, 4  ;;  %s18_s13 = int_to_ptr.vmem [resolvable:$true] %s17_s13  ;;  %s27_s16 = int_to_ptr.hbm [resolvable:$true] %s26_s16 }
   0x4   :  { %20 = dma.hbm_to_vmem [thread:$0]  %s16_s11, 128, %s18_s13, [#allocation7]  }
   0x5   :  { %s280_s17 = smov [#allocation9]  }
   0x6   :  { %s28_s18 = sshll.u32 %s280_s17, 4  ;;  %s29_s18 = int_to_ptr.vmem [resolvable:$true] %s28_s18 }
   0x7   :  { %31 = dma.hbm_to_vmem [thread:$0]  %s27_s16, 128, %s29_s18, [#allocation10]  }
   0x8   :  { %273 = dma.done.wait [#allocation7], 128  }
   0x9   :  { %274 = vsyncadd [#allocation7], 4294967168 }
   0xa   :  { %275 = dma.done.wait [#allocation10], 128  }
   0xb   :  { %276 = vsyncadd [#allocation10], 4294967168  ;;  %v50_v0 = vld [vmem:[#allocation9] sm:$0xff]  ;;  %v281_v1 = vmov 0.0   ;;  %v49_v6 = vld [vmem:[#allocation6] sm:$0xff]  ;;  %vm44_vm2 = vcmask 7168   ;;  %v134_v62 = vlaneseq }
   0xc   :  { %vm51_vm0 = vcmp.gt.f32.partialorder %v50_v0, 0.5  ;;  %vm54_vm1 = vcmp.gt.f32.partialorder %v50_v0, 1.5  ;;  %46 = vst.msk [vmem:[#allocation3] sm:$0xff] %vm44_vm2, %v281_v1  ;;  %vm90_vm3 = vcmp.gt.f32.partialorder %v49_v6, 0.0  ;;  %v282_v35 = vmov 0   ;;  %s283_s0 = smov [#allocation11]  }
   0xd   :  { %v184_v2 = vsel %vm54_vm1, 1.0, %v281_v1  ;;  %v183_v5 = vsel %vm51_vm0, 1.0, %v281_v1  ;;  %45 = vst.msk [vmem:[#allocation2] sm:$0xff] %vm44_vm2, %v281_v1  ;;  %v185_v19 = vsel %vm90_vm3, 1.0, %v281_v1  ;;  %192 = vset.pattern.permute.xlu2 %v282_v35  ;;  %194 = vset.pattern.permute.xlu1 %v282_v35  ;;  %v135_v0 = vand.u32 127, %v134_v62  ;;  %s170_s1 = sshll.u32 %s283_s0, 4  ;;  %s171_s1 = int_to_ptr.vmem [resolvable:$true] %s170_s1 }
   0xe   :  { %v75_v3 = vmul.f32 0.95, %v184_v2  ;;  %v57_v4 = vmul.f32 2.0, %v184_v2  ;;  %47 = vst.msk [vmem:[#allocation4] sm:$0xff] %vm44_vm2, %v281_v1  ;;  %v93_v23 = vsub.f32 %v185_v19, %v184_v2  ;;  %193 = vset.pattern.permute.xlu0 %v282_v35  ;;  %s172_s21 = sshll.u32 %s320_s2, 4  ;;  %s173_s21 = int_to_ptr.hbm [resolvable:$true] %s172_s21 }
   0xf   :  { %48 = vst.msk [vmem:[#allocation5] sm:$0xff] %vm44_vm2, %v281_v1  ;;  %vm139_vm10 = vcmp.eq.s32.totalorder %v135_v0, 3  ;;  %vm138_vm11 = vcmp.eq.s32.totalorder %v135_v0, 2  ;;  %vm137_vm12 = vcmp.eq.s32.totalorder %v135_v0, 1  ;;  %vm136_vm13 = vcmp.eq.s32.totalorder %v135_v0, 0 }
  0x10   :  { %v76_v7 = vadd.f32 0.05, %v75_v3  ;;  %v58_v8 = vsub.f32 1.0, %v57_v4  ;;  %v94_v27 = vand.u32 2147483647, %v93_v23 }
  0x12   :  { %v77_v9 = vmul.f32 %v183_v5, %v76_v7  ;;  %v59_v10 = vmul.f32 %v58_v8, %v49_v6  ;;  %v95_v29 = vsub.f32 1.0, %v94_v27 }
  0x13   :  { %v85_v31 = vld [vmem:[#allocation3] sm:$0xff] }
  0x14   :  { %86 = vadd.xlane.f32.xlu0 %v77_v9  ;;  %v61_v11 = vand.u32 2147483647, %v59_v10  ;;  %v60_v22 = vmax.f32 %v59_v10, 0.0  ;;  %v97_v30 = vmul.f32 %v183_v5, %v95_v29  ;;  %v78_v45 = vld [vmem:[#allocation2] sm:$0xff] }
  0x15   :  { %v96_v52 = vld [vmem:[#allocation4] sm:$0xff] }
  0x16   :  { %v62_v12 = vsub.f32 0.0, %v61_v11  ;;  %v102_v34 = vld [vmem:[#allocation5] sm:$0xff] }
  0x18   :  { %v63_v13 = vmul.f32 1.442695, %v62_v12 }
  0x1a   :  { %195 = vpow2.f32 %v63_v13 }
  0x1c   :  { %103 = vadd.xlane.f32.xlu0 %v183_v5 }
  0x20   :  { %v196_v14 = vpop.eup %195 }
  0x21   :  { %v65_v15 = vadd.f32 1.0, %v196_v14  ;;  %v68_v16 = vmul.f32 -0.5, %v196_v14  ;;  %v71_v18 = vand.u32 2147483647, %v196_v14 }
  0x23   :  { %197 = vlog2.f32 %v65_v15  ;;  %v69_v17 = vadd.f32 1.0, %v68_v16  ;;  %vm72_vm4 = vcmp.lt.f32.partialorder %v71_v18, 0.0004427343 }
  0x25   :  { %v70_v20 = vmul.f32 %v196_v14, %v69_v17 }
  0x29   :  { %v198_v21 = vpop.eup %197 }
  0x2a   :  { %v67_v24 = vmul.f32 0.6931472, %v198_v21 }
  0x2c   :  { %v73_v25 = vsel %vm72_vm4, %v70_v20, %v67_v24 }
  0x2d   :  { %v74_v26 = vadd.f32 %v73_v25, %v60_v22 }
  0x2f   :  { %v79_v28 = vmul.f32 %v77_v9, %v74_v26 }
  0x31   :  { %80 = vadd.xlane.f32.xlu1 %v79_v28 }
  0x39   :  { %98 = vadd.xlane.f32.xlu1 %v97_v30 }
  0x87   :  { %v87_v32 = vpop.xlane.xlu0 %86 }
  0x88   :  { %v88_v33 = vadd.f32 %v87_v32, %v85_v31 }
  0x8a   :  { %89 = vst.msk [vmem:[#allocation3] sm:$0xff] %vm44_vm2, %v88_v33 }
  0x8f   :  { %v104_v36 = vpop.xlane.xlu0 %103 }
  0x90   :  { %v105_v37 = vadd.f32 %v104_v36, %v102_v34 }
  0x91   :  { %v111_v38 = vld [vmem:[#allocation3] sm:$0xff] }
  0x92   :  { %106 = vst.msk [vmem:[#allocation5] sm:$0xff] %vm44_vm2, %v105_v37  ;;  %v117_v39 = vmax.f32 %v111_v38, 1e-20 }
  0x94   :  { %199 = vrcp.f32 %v117_v39  ;;  %vm123_vm6 = vweird.f32 %v117_v39  ;;  %v129_v49 = vand.u32 2147483648, %v117_v39  ;;  %v127_v51 = vand.u32 2147483647, %v117_v39 }
  0x96   :  { %v130_v53 = vor.u32 1.1754944e-38, %v129_v49  ;;  %vm128_vm9 = vcmp.eq.f32.partialorder %v127_v51, 8.507059e+37 }
  0x99   :  { %v113_v40 = vld [vmem:[#allocation5] sm:$0xff] }
  0x9a   :  { %v200_v41 = vpop.eup %199  ;;  %vm114_vm5 = vcmp.gt.f32.partialorder %v113_v40, 0.5 }
  0x9b   :  { %v186_v42 = vsel %vm114_vm5, 1.0, %v281_v1  ;;  %v119_v43 = vmul.f32 %v200_v41, %v117_v39  ;;  %vm124_vm7 = vweird.f32 %v200_v41 }
  0x9c   :  { %142 = vperm.xlu2 %192, %v186_v42   ;;  %vm125_vm8 = vmor %vm123_vm6, %vm124_vm7 }
  0x9d   :  { %v120_v44 = vsub.f32 1.0, %v119_v43 }
  0x9f   :  { %v121_v46 = vmul.f32 %v200_v41, %v120_v44 }
  0xa1   :  { %v122_v50 = vadd.f32 %v200_v41, %v121_v46 }
  0xa3   :  { %v126_v54 = vsel %vm125_vm8, %v200_v41, %v122_v50 }
  0xa4   :  { %v81_v47 = vpop.xlane.xlu1 %80  ;;  %148 = vperm.xlu2 %192, %v113_v40   ;;  %v131_v58 = vsel %vm128_vm9, %v130_v53, %v126_v54 }
  0xa5   :  { %v82_v48 = vadd.f32 %v81_v47, %v78_v45 }
  0xa7   :  { %84 = vst.msk [vmem:[#allocation2] sm:$0xff] %vm44_vm2, %v82_v48 }
  0xac   :  { %v99_v55 = vpop.xlane.xlu1 %98 }
  0xad   :  { %v100_v56 = vadd.f32 %v99_v55, %v96_v52 }
  0xae   :  { %v110_v57 = vld [vmem:[#allocation2] sm:$0xff] }
  0xaf   :  { %101 = vst.msk [vmem:[#allocation4] sm:$0xff] %vm44_vm2, %v100_v56  ;;  %v132_v59 = vmul.f32 %v131_v58, %v110_v57 }
  0xb1   :  { %v133_v60 = vsel %vm114_vm5, %v132_v59, 0.0 }
  0xb2   :  { %160 = vperm.xlu1 %194, %v133_v60  }
  0xb6   :  { %v112_v61 = vld [vmem:[#allocation4] sm:$0xff] }
  0xb7   :  { %154 = vperm.xlu0 %193, %v112_v61  }
  0xf6   :  { %v143_v63 = vpop.permute.xlu2 %142 }
  0xf7   :  { %v145_v1 = vsel %vm139_vm10, %v143_v63, 0.0 }
  0xfe   :  { %v149_v2 = vpop.permute.xlu2 %148 }
  0xff   :  { %v151_v3 = vsel %vm138_vm11, %v149_v2, %v145_v1 }
 0x124   :  { %v161_v5 = vpop.permute.xlu1 %160 }
 0x129   :  { %v155_v4 = vpop.permute.xlu0 %154 }
 0x12a   :  { %v157_v6 = vsel %vm137_vm12, %v155_v4, %v151_v3 }
 0x12b   :  { %v163_v7 = vsel %vm136_vm13, %v161_v5, %v157_v6 }
 0x12c   :  { %164 = vst [vmem:[#allocation11] sm:$0xff] %v163_v7 }
 0x12d   :  { %175 = dma.vmem_to_hbm [thread:$0]  %s171_s1, 128, %s173_s21, [#allocation8]  }
 0x12e   :  { %277 = dma.done.wait [#allocation8], 128  }
 0x12f   :  { %278 = vsyncadd [#allocation8], 4294967168 }
 0x130   :  { %180 = vsyncpa [#allocation7], 1 }
 0x131   :  { %181 = vsyncpa [#allocation10], 1 }
 0x132   :  { %182 = vsyncpa [#allocation8], 1 }

</bundles_post_ra>
